<compile_context>
chip_gen: v5e
topology: v5e:2x2
jax: 0.10.0
libtpu: 0.0.40
codegen_flags: <defaults>
</compile_context>

<pallas_src>
import functools

import jax
import jax.numpy as jnp
import numpy as np
from jax.experimental import pallas as pl
from jax.experimental.pallas import tpu as pltpu


def _round_up(x, m):
    return ((x + m - 1) // m) * m


def _vmem_budget_bytes():
    """~75% of per-core VMEM: ~96 MiB on v5e/v6e (128 MiB), ~48 MiB on v7x (64 MiB)."""
    cap = 64 * 1024 * 1024                      # conservative fallback (v7x per-core)
    try:
        info_cap = int(pltpu.get_tpu_info().vmem_capacity_bytes)
        if info_cap > 0:
            cap = info_cap
    except Exception:
        pass
    cap = min(cap, 128 * 1024 * 1024)
    return (cap * 3) // 4


# ----------------------------------------------------------------------------
# Pallas kernel: fused 3-layer double-Q MLP (+ optional clip) for one batch tile.
# ----------------------------------------------------------------------------
def _critic_kernel(x_ref, w1_ref, b1_ref, w2_ref, b2_ref, w3_ref, b3_ref, out_ref,
                   *, n_heads, hidden, split_heads, clip, q_max, matmul_dtype):
    md = matmul_dtype

    # Layer 1: heads fused along N (dense (D_in, Hf) -> no zero-block waste).
    h1 = jnp.dot(x_ref[...], w1_ref[...], preferred_element_type=jnp.float32)
    h1 = jnp.maximum(h1 + b1_ref[...], 0.0)                 # (TB, Hf) f32

    q_cols = []
    h2_fused = None
    for j in range(n_heads):                                # static loop, n_heads <= 2
        if split_heads:
            # Un-fused layer 2: lane-aligned per-head slice (H % 128 == 0) + (H, H) dot.
            h1_j = h1[:, j * hidden:(j + 1) * hidden]
            h2_j = jnp.dot(h1_j.astype(md), w2_ref[j],
                           preferred_element_type=jnp.float32)
            h2_j = jnp.maximum(h2_j + b2_ref[j:j + 1, :], 0.0)
        else:
            # Fused block-diagonal layer 2 (small H / single head).
            if h2_fused is None:
                h2_fused = jnp.dot(h1.astype(md), w2_ref[...],
                                   preferred_element_type=jnp.float32)
                h2_fused = jnp.maximum(h2_fused + b2_ref[...], 0.0)
            h2_j = h2_fused
        # Layer 3 off the MXU: VPU multiply by the broadcast w3 row + XLU lane reduce.
        q_cols.append(jnp.sum(h2_j * w3_ref[j:j + 1, :], axis=-1, keepdims=True))

    q = q_cols[0] if n_heads == 1 else jnp.concatenate(q_cols, axis=-1)
    q = q + b3_ref[...]
    if clip:
        q = jnp.clip(q, -q_max, q_max)
    out_ref[...] = q.astype(out_ref.dtype)


def _weight_spec(shape, single_buffer):
    idx = lambda i, nd=len(shape): (0,) * nd                # grid-invariant (resident)
    if single_buffer:
        return pl.BlockSpec(shape, idx, pipeline_mode=pl.Buffered(1))
    return pl.BlockSpec(shape, idx)


# ----------------------------------------------------------------------------
# Wrapper: input fusion, weight packing, tiling over batch + pallas_call.
# ----------------------------------------------------------------------------
def critic_wrapper_forward(obs, act, done, params, *, use_done, use_double, q_max,
                           clip=False, tile_b=None, matmul_dtype=jnp.bfloat16):
    obs = obs.astype(jnp.float32)
    act = act.astype(jnp.float32)
    B = obs.shape[0]

    # ---- compute_inputs at the JAX level (single lane-padded kernel input). ----
    x = jnp.concatenate([obs, act], axis=-1)
    if use_done:
        d = done.astype(jnp.float32).reshape(B, 1)
        x = jnp.concatenate([(1.0 - d) * x, d], axis=-1)
    d_in = x.shape[-1]
    x = x.astype(matmul_dtype)                              # halves input DMA on bf16 path

    heads = ("q1", "q2") if use_double else ("q1",)
    n_heads = len(heads)
    H = int(params["q1"]["w1"].shape[-1])
    Hf = n_heads * H
    assert int(params["q1"]["w1"].shape[0]) == d_in, "param / input dim mismatch"
    # Un-fuse the block-diagonal W2 whenever the per-head slices are lane-aligned.
    split_heads = bool(use_double and H % 128 == 0)

    # ---- weight packing (heads fused along the output axis of layer 1). ----
    f32 = jnp.float32
    w1 = jnp.concatenate([params[h]["w1"].astype(f32) for h in heads], axis=1)
    w1 = w1.astype(matmul_dtype)                                               # (d_in, Hf)
    b1 = jnp.concatenate([params[h]["b1"].astype(f32) for h in heads]).reshape(1, Hf)
    if split_heads:
        w2 = jnp.stack([params[h]["w2"].astype(f32) for h in heads]).astype(matmul_dtype)
        b2 = jnp.stack([params[h]["b2"].astype(f32) for h in heads])           # (n, H)
        w3 = jnp.stack([params[h]["w3"].astype(f32)[:, 0] for h in heads])     # (n, H), VPU
    else:
        w2 = jnp.zeros((Hf, Hf), f32)
        w3 = jnp.zeros((n_heads, Hf), f32)
        for j, h in enumerate(heads):
            w2 = w2.at[j * H:(j + 1) * H, j * H:(j + 1) * H].set(params[h]["w2"].astype(f32))
            w3 = w3.at[j, j * H:(j + 1) * H].set(params[h]["w3"].astype(f32)[:, 0])
        w2 = w2.astype(matmul_dtype)
        b2 = jnp.concatenate([params[h]["b2"].astype(f32) for h in heads]).reshape(1, Hf)
    b3 = jnp.concatenate([params[h]["b3"].astype(f32) for h in heads]).reshape(1, n_heads)
    weights = [w1, b1, w2, b2, w3, b3]
    weight_bytes = sum(int(w.size) * w.dtype.itemsize for w in weights)

    # ---- batch tile: derived from the per-generation VMEM budget. ----
    in_item = np.dtype(matmul_dtype).itemsize
    align = 16 if np.dtype(matmul_dtype) == np.dtype(jnp.bfloat16) else 8
    budget = _vmem_budget_bytes()
    if tile_b is None:
        d_pad = _round_up(d_in, 128)
        hf_pad = _round_up(Hf, 128)
        per_row = (2 * d_pad * in_item          # double-buffered input tile
                   + 2 * 128 * 4                # double-buffered (lane-padded) output tile
                   + 4 * hf_pad * 4)            # h1/h2 f32 intermediates + cast temps
        avail = max(budget - weight_bytes, per_row * align)
        tile_b = min(1024, avail // per_row, _round_up(B, align))
    tile_b = max(align, (int(tile_b) // align) * align)
    # Give megacore (2 TCs on v7x) >=2 grid steps once the batch is big enough that
    # the ~0.35us/step overhead is amortised.
    if B >= 256 and pl.cdiv(B, tile_b) < 2:
        tile_b = max(align, _round_up((B + 1) // 2, align))
    n_steps = pl.cdiv(B, tile_b)
    B_pad = n_steps * tile_b
    if B_pad != B:
        x = jnp.pad(x, ((0, B_pad - B), (0, 0)))

    kernel = functools.partial(
        _critic_kernel, n_heads=n_heads, hidden=H, split_heads=split_heads,
        clip=bool(clip), q_max=float(q_max), matmul_dtype=matmul_dtype)

    # Scheduling hint (un-fused W2 counts only the dense per-head blocks).
    l2 = 2 * n_heads * H * H if split_heads else 2 * Hf * Hf
    l3 = 2 * n_heads * (H if split_heads else Hf)
    flops = B_pad * (2 * d_in * Hf + l2 + l3)
    bytes_accessed = B_pad * d_in * in_item + weight_bytes + B_pad * n_heads * 4

    def make_call(single_buffer_weights):
        in_specs = [pl.BlockSpec((tile_b, d_in), lambda i: (i, 0))]
        in_specs += [_weight_spec(w.shape, single_buffer_weights) for w in weights]
        return pl.pallas_call(
            kernel,
            out_shape=jax.ShapeDtypeStruct((B_pad, n_heads), jnp.float32),
            grid=(n_steps,),
            in_specs=in_specs,
            out_specs=pl.BlockSpec((tile_b, n_heads), lambda i: (i, 0)),
            compiler_params=pltpu.CompilerParams(
                dimension_semantics=("parallel",),
                vmem_limit_bytes=int(budget)),
            cost_estimate=pl.CostEstimate(flops=flops, transcendentals=0,
                                          bytes_accessed=bytes_accessed),
        )

    try:
        out = make_call(True)(x, *weights)      # single-buffered resident weights
    except Exception:
        # Fallback for jax versions without Buffered(1) single-buffering support.
        out = make_call(False)(x, *weights)

    q = out[:B]
    q1 = q[:, 0:1]
    q2 = q[:, 1:2] if use_double else q1        # use_double=False: no second store
    return q1, q2


# ----------------------------------------------------------------------------
# Pure-JAX reference (mirrors the PyTorch forward) for a correctness check.
# ----------------------------------------------------------------------------
def reference_forward(obs, act, done, params, *, use_done, use_double, q_max, clip):
    inputs = jnp.concatenate([obs, act], axis=-1)
    if use_done:
        inputs = jnp.concatenate([(1.0 - done) * inputs, done], axis=-1)

    def mlp(p, xx):
        h = jnp.maximum(xx @ p["w1"] + p["b1"], 0.0)
        h = jnp.maximum(h @ p["w2"] + p["b2"], 0.0)
        return h @ p["w3"] + p["b3"]

    q1 = mlp(params["q1"], inputs)
    q2 = mlp(params["q2"], inputs) if use_double else q1
    if clip:
        q1 = jnp.clip(q1, -q_max, q_max)
        q2 = jnp.clip(q2, -q_max, q_max)
    return q1, q2


# ----------------------------------------------------------------------------
# Deterministic parameter init (zero_final=True mirrors CriticWrapper.__init__).
# ----------------------------------------------------------------------------
def init_params(key, d_in, hidden, *, zero_final=True):
    def head(k):
        k1, k2, k3, k4, k5, k6 = jax.random.split(k, 6)
        p = {
            "w1": jax.random.normal(k1, (d_in, hidden), jnp.float32) * 0.1,
            "b1": jax.random.normal(k2, (hidden,), jnp.float32) * 0.1,
            "w2": jax.random.normal(k3, (hidden, hidden), jnp.float32) * 0.1,
            "b2": jax.random.normal(k4, (hidden,), jnp.float32) * 0.1,
            "w3": jax.random.normal(k5, (hidden, 1), jnp.float32) * 0.1,
            "b3": jax.random.normal(k6, (1,), jnp.float32) * 0.1,
        }
        if zero_final:
            p["w3"] = jnp.zeros_like(p["w3"])
            p["b3"] = jnp.zeros_like(p["b3"])
        return p

    ka, kb = jax.random.split(key)
    return {"q1": head(ka), "q2": head(kb)}


# TODO(synk): compute_grad_penalty (autodiff-based) is not re-implemented as a kernel;
# it should use jax.grad over this forward at the JAX level.

if __name__ == "__main__":
    B, OBS_DIM, ACT_DIM = 8, 11, 3
    Q_MAX = 100.0

    key = jax.random.PRNGKey(0)
    k_obs, k_act, k_done, k_param = jax.random.split(key, 4)
    obs = jax.random.normal(k_obs, (B, OBS_DIM), jnp.float32)
    act = jax.random.normal(k_act, (B, ACT_DIM), jnp.float32)
    done = (jax.random.uniform(k_done, (B, 1)) > 0.5).astype(jnp.float32)

    def check(use_done, use_double, zero_final, hidden, rtol, atol, matmul_dtype=None):
        d_in = OBS_DIM + ACT_DIM + (1 if use_done else 0)
        params = init_params(k_param, d_in, hidden, zero_final=zero_final)
        kwargs = {} if matmul_dtype is None else {"matmul_dtype": matmul_dtype}
        q1, q2 = critic_wrapper_forward(
            obs, act, done, params,
            use_done=use_done, use_double=use_double, q_max=Q_MAX, clip=True, **kwargs)
        jax.block_until_ready((q1, q2))
        r1, r2 = reference_forward(
            obs, act, done, params,
            use_done=use_done, use_double=use_double, q_max=Q_MAX, clip=True)
        np.testing.assert_allclose(np.asarray(q1), np.asarray(r1), rtol=rtol, atol=atol)
        np.testing.assert_allclose(np.asarray(q2), np.asarray(r2), rtol=rtol, atol=atol)
        return q1, q2

    # 1) Faithful to CriticWrapper.__init__ (zeroed final layer -> exact zeros),
    #    default bf16 matmul-operand path.
    check(True, True, True, 32, 0.0, 0.0)
    # 2) Non-degenerate final layer, f32 operands, fused (small-H) path.
    check(True, True, False, 32, 2e-3, 2e-3, matmul_dtype=jnp.float32)
    # 3) use_done=False path (no done column in the packed input).
    check(False, True, False, 32, 2e-3, 2e-3, matmul_dtype=jnp.float32)
    # 4) use_double=False path (single head, single output column).
    q1s, q2s = check(True, False, False, 32, 2e-3, 2e-3, matmul_dtype=jnp.float32)
    np.testing.assert_allclose(np.asarray(q1s), np.asarray(q2s))
    # 5) bf16 matmul-operand path with a non-zero final layer (loose tolerance).
    check(True, True, False, 32, 5e-2, 5e-2, matmul_dtype=jnp.bfloat16)
    # 6) H=128: exercises the un-fused (split_heads) per-head W2 path.
    check(True, True, False, 128, 2e-3, 2e-3, matmul_dtype=jnp.float32)

    print("KERNEL_OK")
</pallas_src>

<mosaic_0001>
module attributes {stable_mosaic.version = 11 : i64} {
  func.func @_critic_kernel(%arg0: i32, %arg1: memref<16x15xbf16, #tpu.memory_space<vmem>>, %arg2: memref<15x64xbf16, #tpu.memory_space<vmem>>, %arg3: memref<1x64xf32, #tpu.memory_space<vmem>>, %arg4: memref<64x64xbf16, #tpu.memory_space<vmem>>, %arg5: memref<1x64xf32, #tpu.memory_space<vmem>>, %arg6: memref<2x64xf32, #tpu.memory_space<vmem>>, %arg7: memref<1x2xf32, #tpu.memory_space<vmem>>, %arg8: memref<16x2xf32, #tpu.memory_space<vmem>>) attributes {dimension_semantics = [#tpu.dimension_semantics<parallel>], iteration_bounds = array<i64: 1>, scalar_prefetch = 0 : i64, scratch_operands = 0 : i64, tpu.core_type = #tpu.core_type<tc>, window_params = [{transform_indices = @transform_0, window_bounds = array<i64: 16, 15>}, {pipeline_mode = #tpu.pipeline_mode<synchronous>, transform_indices = @transform_1, window_bounds = array<i64: 15, 64>}, {pipeline_mode = #tpu.pipeline_mode<synchronous>, transform_indices = @transform_2, window_bounds = array<i64: 1, 64>}, {pipeline_mode = #tpu.pipeline_mode<synchronous>, transform_indices = @transform_3, window_bounds = array<i64: 64, 64>}, {pipeline_mode = #tpu.pipeline_mode<synchronous>, transform_indices = @transform_4, window_bounds = array<i64: 1, 64>}, {pipeline_mode = #tpu.pipeline_mode<synchronous>, transform_indices = @transform_5, window_bounds = array<i64: 2, 64>}, {pipeline_mode = #tpu.pipeline_mode<synchronous>, transform_indices = @transform_6, window_bounds = array<i64: 1, 2>}, {transform_indices = @transform_7, window_bounds = array<i64: 16, 2>}]} {
    %c0 = arith.constant 0 : index
    %c0_0 = arith.constant 0 : index
    %0 = vector.load %arg1[%c0, %c0_0] : memref<16x15xbf16, #tpu.memory_space<vmem>>, vector<16x15xbf16>
    %c0_1 = arith.constant 0 : index
    %c0_2 = arith.constant 0 : index
    %1 = vector.load %arg2[%c0_1, %c0_2] : memref<15x64xbf16, #tpu.memory_space<vmem>>, vector<15x64xbf16>
    %cst = arith.constant dense<0.000000e+00> : vector<16x64xf32>
    %2 = tpu.matmul %0, %1, %cst {dimension_numbers = #tpu.dot_dimension_numbers<[1], [0], [0], [1], [0, 0, 1, 1], [], []>} : vector<16x15xbf16>, vector<15x64xbf16>, vector<16x64xf32> -> vector<16x64xf32>
    %c0_3 = arith.constant 0 : index
    %c0_4 = arith.constant 0 : index
    %3 = vector.load %arg3[%c0_3, %c0_4] : memref<1x64xf32, #tpu.memory_space<vmem>>, vector<1x64xf32>
    %4 = vector.broadcast %3 : vector<1x64xf32> to vector<16x64xf32>
    %5 = arith.addf %2, %4 : vector<16x64xf32>
    %cst_5 = arith.constant 0.000000e+00 : f32
    %6 = vector.broadcast %cst_5 : f32 to vector<16x64xf32>
    %7 = arith.maximumf %5, %6 : vector<16x64xf32>
    %8 = arith.truncf %7 : vector<16x64xf32> to vector<16x64xbf16>
    %c0_6 = arith.constant 0 : index
    %c0_7 = arith.constant 0 : index
    %9 = vector.load %arg4[%c0_6, %c0_7] : memref<64x64xbf16, #tpu.memory_space<vmem>>, vector<64x64xbf16>
    %cst_8 = arith.constant dense<0.000000e+00> : vector<16x64xf32>
    %10 = tpu.matmul %8, %9, %cst_8 {dimension_numbers = #tpu.dot_dimension_numbers<[1], [0], [0], [1], [0, 0, 1, 1], [], []>} : vector<16x64xbf16>, vector<64x64xbf16>, vector<16x64xf32> -> vector<16x64xf32>
    %c0_9 = arith.constant 0 : index
    %c0_10 = arith.constant 0 : index
    %11 = vector.load %arg5[%c0_9, %c0_10] : memref<1x64xf32, #tpu.memory_space<vmem>>, vector<1x64xf32>
    %12 = vector.broadcast %11 : vector<1x64xf32> to vector<16x64xf32>
    %13 = arith.addf %10, %12 : vector<16x64xf32>
    %cst_11 = arith.constant 0.000000e+00 : f32
    %14 = vector.broadcast %cst_11 : f32 to vector<16x64xf32>
    %15 = arith.maximumf %13, %14 : vector<16x64xf32>
    %c0_12 = arith.constant 0 : index
    %c0_13 = arith.constant 0 : index
    %16 = vector.load %arg6[%c0_12, %c0_13] : memref<2x64xf32, #tpu.memory_space<vmem>>, vector<1x64xf32>
    %17 = vector.broadcast %16 : vector<1x64xf32> to vector<16x64xf32>
    %18 = arith.mulf %15, %17 : vector<16x64xf32>
    %cst_14 = arith.constant dense<0.000000e+00> : vector<16xf32>
    %19 = vector.multi_reduction <add>, %18, %cst_14 [1] : vector<16x64xf32> to vector<16xf32>
    %20 = vector.shape_cast %19 : vector<16xf32> to vector<16x1xf32>
    %c1 = arith.constant 1 : index
    %c0_15 = arith.constant 0 : index
    %21 = vector.load %arg6[%c1, %c0_15] : memref<2x64xf32, #tpu.memory_space<vmem>>, vector<1x64xf32>
    %22 = vector.broadcast %21 : vector<1x64xf32> to vector<16x64xf32>
    %23 = arith.mulf %15, %22 : vector<16x64xf32>
    %cst_16 = arith.constant dense<0.000000e+00> : vector<16xf32>
    %24 = vector.multi_reduction <add>, %23, %cst_16 [1] : vector<16x64xf32> to vector<16xf32>
    %25 = vector.shape_cast %24 : vector<16xf32> to vector<16x1xf32>
    %26 = tpu.concatenate %20, %25 in 1 : vector<16x1xf32>, vector<16x1xf32> -> vector<16x2xf32>
    %c0_17 = arith.constant 0 : index
    %c0_18 = arith.constant 0 : index
    %27 = vector.load %arg7[%c0_17, %c0_18] : memref<1x2xf32, #tpu.memory_space<vmem>>, vector<1x2xf32>
    %28 = vector.broadcast %27 : vector<1x2xf32> to vector<16x2xf32>
    %29 = arith.addf %26, %28 : vector<16x2xf32>
    %cst_19 = arith.constant -1.000000e+02 : f32
    %cst_20 = arith.constant 1.000000e+02 : f32
    %30 = vector.broadcast %cst_19 : f32 to vector<16x2xf32>
    %31 = arith.maximumf %30, %29 : vector<16x2xf32>
    %32 = vector.broadcast %cst_20 : f32 to vector<16x2xf32>
    %33 = arith.minimumf %32, %31 : vector<16x2xf32>
    %c0_21 = arith.constant 0 : index
    %c0_22 = arith.constant 0 : index
    %34 = vector.load %arg8[%c0_21, %c0_22] : memref<16x2xf32, #tpu.memory_space<vmem>>, vector<16x2xf32>
    tpu.vector_store %arg8[%c0_21, %c0_22], %33 {strides = array<i32>} : memref<16x2xf32, #tpu.memory_space<vmem>>, vector<16x2xf32>,
    return
  }
  func.func @transform_0(%arg0: i32) -> (i32, i32) {
    %c0_i32 = arith.constant 0 : i32
    %c0_i32_0 = arith.constant 0 : i32
    return %arg0, %c0_i32 : i32, i32
  }
  func.func @transform_1(%arg0: i32) -> (i32, i32) {
    %c0_i32 = arith.constant 0 : i32
    %c0_i32_0 = arith.constant 0 : i32
    %c0_i32_1 = arith.constant 0 : i32
    return %c0_i32, %c0_i32_0 : i32, i32
  }
  func.func @transform_2(%arg0: i32) -> (i32, i32) {
    %c0_i32 = arith.constant 0 : i32
    %c0_i32_0 = arith.constant 0 : i32
    %c0_i32_1 = arith.constant 0 : i32
    return %c0_i32, %c0_i32_0 : i32, i32
  }
  func.func @transform_3(%arg0: i32) -> (i32, i32) {
    %c0_i32 = arith.constant 0 : i32
    %c0_i32_0 = arith.constant 0 : i32
    %c0_i32_1 = arith.constant 0 : i32
    return %c0_i32, %c0_i32_0 : i32, i32
  }
  func.func @transform_4(%arg0: i32) -> (i32, i32) {
    %c0_i32 = arith.constant 0 : i32
    %c0_i32_0 = arith.constant 0 : i32
    %c0_i32_1 = arith.constant 0 : i32
    return %c0_i32, %c0_i32_0 : i32, i32
  }
  func.func @transform_5(%arg0: i32) -> (i32, i32) {
    %c0_i32 = arith.constant 0 : i32
    %c0_i32_0 = arith.constant 0 : i32
    %c0_i32_1 = arith.constant 0 : i32
    return %c0_i32, %c0_i32_0 : i32, i32
  }
  func.func @transform_6(%arg0: i32) -> (i32, i32) {
    %c0_i32 = arith.constant 0 : i32
    %c0_i32_0 = arith.constant 0 : i32
    %c0_i32_1 = arith.constant 0 : i32
    return %c0_i32, %c0_i32_0 : i32, i32
  }
  func.func @transform_7(%arg0: i32) -> (i32, i32) {
    %c0_i32 = arith.constant 0 : i32
    %c0_i32_0 = arith.constant 0 : i32
    return %arg0, %c0_i32 : i32, i32
  }
}

module attributes {stable_mosaic.version = 11 : i64} {
  func.func @_critic_kernel(%arg0: i32, %arg1: memref<16x15xbf16, #tpu.memory_space<vmem>>, %arg2: memref<15x64xbf16, #tpu.memory_space<vmem>>, %arg3: memref<1x64xf32, #tpu.memory_space<vmem>>, %arg4: memref<64x64xbf16, #tpu.memory_space<vmem>>, %arg5: memref<1x64xf32, #tpu.memory_space<vmem>>, %arg6: memref<2x64xf32, #tpu.memory_space<vmem>>, %arg7: memref<1x2xf32, #tpu.memory_space<vmem>>, %arg8: memref<16x2xf32, #tpu.memory_space<vmem>>) attributes {dimension_semantics = [#tpu.dimension_semantics<parallel>], iteration_bounds = array<i64: 1>, scalar_prefetch = 0 : i64, scratch_operands = 0 : i64, tpu.core_type = #tpu.core_type<tc>, window_params = [{transform_indices = @transform_0, window_bounds = array<i64: 16, 15>}, {pipeline_mode = #tpu.pipeline_mode<synchronous>, transform_indices = @transform_1, window_bounds = array<i64: 15, 64>}, {pipeline_mode = #tpu.pipeline_mode<synchronous>, transform_indices = @transform_2, window_bounds = array<i64: 1, 64>}, {pipeline_mode = #tpu.pipeline_mode<synchronous>, transform_indices = @transform_3, window_bounds = array<i64: 64, 64>}, {pipeline_mode = #tpu.pipeline_mode<synchronous>, transform_indices = @transform_4, window_bounds = array<i64: 1, 64>}, {pipeline_mode = #tpu.pipeline_mode<synchronous>, transform_indices = @transform_5, window_bounds = array<i64: 2, 64>}, {pipeline_mode = #tpu.pipeline_mode<synchronous>, transform_indices = @transform_6, window_bounds = array<i64: 1, 2>}, {transform_indices = @transform_7, window_bounds = array<i64: 16, 2>}]} {
    %c0 = arith.constant 0 : index
    %c0_0 = arith.constant 0 : index
    %0 = vector.load %arg1[%c0, %c0_0] : memref<16x15xbf16, #tpu.memory_space<vmem>>, vector<16x15xbf16>
    %c0_1 = arith.constant 0 : index
    %c0_2 = arith.constant 0 : index
    %1 = vector.load %arg2[%c0_1, %c0_2] : memref<15x64xbf16, #tpu.memory_space<vmem>>, vector<15x64xbf16>
    %cst = arith.constant dense<0.000000e+00> : vector<16x64xf32>
    %2 = tpu.matmul %0, %1, %cst {dimension_numbers = #tpu.dot_dimension_numbers<[1], [0], [0], [1], [0, 0, 1, 1], [], []>} : vector<16x15xbf16>, vector<15x64xbf16>, vector<16x64xf32> -> vector<16x64xf32>
    %c0_3 = arith.constant 0 : index
    %c0_4 = arith.constant 0 : index
    %3 = vector.load %arg3[%c0_3, %c0_4] : memref<1x64xf32, #tpu.memory_space<vmem>>, vector<1x64xf32>
    %4 = vector.broadcast %3 : vector<1x64xf32> to vector<16x64xf32>
    %5 = arith.addf %2, %4 : vector<16x64xf32>
    %cst_5 = arith.constant 0.000000e+00 : f32
    %6 = vector.broadcast %cst_5 : f32 to vector<16x64xf32>
    %7 = arith.maximumf %5, %6 : vector<16x64xf32>
    %8 = arith.truncf %7 : vector<16x64xf32> to vector<16x64xbf16>
    %c0_6 = arith.constant 0 : index
    %c0_7 = arith.constant 0 : index
    %9 = vector.load %arg4[%c0_6, %c0_7] : memref<64x64xbf16, #tpu.memory_space<vmem>>, vector<64x64xbf16>
    %cst_8 = arith.constant dense<0.000000e+00> : vector<16x64xf32>
    %10 = tpu.matmul %8, %9, %cst_8 {dimension_numbers = #tpu.dot_dimension_numbers<[1], [0], [0], [1], [0, 0, 1, 1], [], []>} : vector<16x64xbf16>, vector<64x64xbf16>, vector<16x64xf32> -> vector<16x64xf32>
    %c0_9 = arith.constant 0 : index
    %c0_10 = arith.constant 0 : index
    %11 = vector.load %arg5[%c0_9, %c0_10] : memref<1x64xf32, #tpu.memory_space<vmem>>, vector<1x64xf32>
    %12 = vector.broadcast %11 : vector<1x64xf32> to vector<16x64xf32>
    %13 = arith.addf %10, %12 : vector<16x64xf32>
    %cst_11 = arith.constant 0.000000e+00 : f32
    %14 = vector.broadcast %cst_11 : f32 to vector<16x64xf32>
    %15 = arith.maximumf %13, %14 : vector<16x64xf32>
    %c0_12 = arith.constant 0 : index
    %c0_13 = arith.constant 0 : index
    %16 = vector.load %arg6[%c0_12, %c0_13] : memref<2x64xf32, #tpu.memory_space<vmem>>, vector<1x64xf32>
    %17 = vector.broadcast %16 : vector<1x64xf32> to vector<16x64xf32>
    %18 = arith.mulf %15, %17 : vector<16x64xf32>
    %cst_14 = arith.constant dense<0.000000e+00> : vector<16xf32>
    %19 = vector.multi_reduction <add>, %18, %cst_14 [1] : vector<16x64xf32> to vector<16xf32>
    %20 = vector.shape_cast %19 : vector<16xf32> to vector<16x1xf32>
    %c1 = arith.constant 1 : index
    %c0_15 = arith.constant 0 : index
    %21 = vector.load %arg6[%c1, %c0_15] : memref<2x64xf32, #tpu.memory_space<vmem>>, vector<1x64xf32>
    %22 = vector.broadcast %21 : vector<1x64xf32> to vector<16x64xf32>
    %23 = arith.mulf %15, %22 : vector<16x64xf32>
    %cst_16 = arith.constant dense<0.000000e+00> : vector<16xf32>
    %24 = vector.multi_reduction <add>, %23, %cst_16 [1] : vector<16x64xf32> to vector<16xf32>
    %25 = vector.shape_cast %24 : vector<16xf32> to vector<16x1xf32>
    %26 = tpu.concatenate %20, %25 in 1 : vector<16x1xf32>, vector<16x1xf32> -> vector<16x2xf32>
    %c0_17 = arith.constant 0 : index
    %c0_18 = arith.constant 0 : index
    %27 = vector.load %arg7[%c0_17, %c0_18] : memref<1x2xf32, #tpu.memory_space<vmem>>, vector<1x2xf32>
    %28 = vector.broadcast %27 : vector<1x2xf32> to vector<16x2xf32>
    %29 = arith.addf %26, %28 : vector<16x2xf32>
    %cst_19 = arith.constant -1.000000e+02 : f32
    %cst_20 = arith.constant 1.000000e+02 : f32
    %30 = vector.broadcast %cst_19 : f32 to vector<16x2xf32>
    %31 = arith.maximumf %30, %29 : vector<16x2xf32>
    %32 = vector.broadcast %cst_20 : f32 to vector<16x2xf32>
    %33 = arith.minimumf %32, %31 : vector<16x2xf32>
    %c0_21 = arith.constant 0 : index
    %c0_22 = arith.constant 0 : index
    %34 = vector.load %arg8[%c0_21, %c0_22] : memref<16x2xf32, #tpu.memory_space<vmem>>, vector<16x2xf32>
    tpu.vector_store %arg8[%c0_21, %c0_22], %33 {strides = array<i32>} : memref<16x2xf32, #tpu.memory_space<vmem>>, vector<16x2xf32>,
    return
  }
  func.func @transform_0(%arg0: i32) -> (i32, i32) {
    %c0_i32 = arith.constant 0 : i32
    %c0_i32_0 = arith.constant 0 : i32
    return %arg0, %c0_i32 : i32, i32
  }
  func.func @transform_1(%arg0: i32) -> (i32, i32) {
    %c0_i32 = arith.constant 0 : i32
    %c0_i32_0 = arith.constant 0 : i32
    %c0_i32_1 = arith.constant 0 : i32
    return %c0_i32, %c0_i32_0 : i32, i32
  }
  func.func @transform_2(%arg0: i32) -> (i32, i32) {
    %c0_i32 = arith.constant 0 : i32
    %c0_i32_0 = arith.constant 0 : i32
    %c0_i32_1 = arith.constant 0 : i32
    return %c0_i32, %c0_i32_0 : i32, i32
  }
  func.func @transform_3(%arg0: i32) -> (i32, i32) {
    %c0_i32 = arith.constant 0 : i32
    %c0_i32_0 = arith.constant 0 : i32
    %c0_i32_1 = arith.constant 0 : i32
    return %c0_i32, %c0_i32_0 : i32, i32
  }
  func.func @transform_4(%arg0: i32) -> (i32, i32) {
    %c0_i32 = arith.constant 0 : i32
    %c0_i32_0 = arith.constant 0 : i32
    %c0_i32_1 = arith.constant 0 : i32
    return %c0_i32, %c0_i32_0 : i32, i32
  }
  func.func @transform_5(%arg0: i32) -> (i32, i32) {
    %c0_i32 = arith.constant 0 : i32
    %c0_i32_0 = arith.constant 0 : i32
    %c0_i32_1 = arith.constant 0 : i32
    return %c0_i32, %c0_i32_0 : i32, i32
  }
  func.func @transform_6(%arg0: i32) -> (i32, i32) {
    %c0_i32 = arith.constant 0 : i32
    %c0_i32_0 = arith.constant 0 : i32
    %c0_i32_1 = arith.constant 0 : i32
    return %c0_i32, %c0_i32_0 : i32, i32
  }
  func.func @transform_7(%arg0: i32) -> (i32, i32) {
    %c0_i32 = arith.constant 0 : i32
    %c0_i32_0 = arith.constant 0 : i32
    return %arg0, %c0_i32 : i32, i32
  }
}

</mosaic_0001>

<bundles_post_ra>
// kernel: tpu_custom_call.1
= control target key start
LH: loop header
LB: loop body
LE: loop exit
PB: predicated region body
PF: predicated region fallthrough
CT: control target
= control target key end

     0   :  { %12 = vsyncpa [#allocation3], 0  ;;  %s463_s0 = inlined_call_operand.hbm [shape: bf16[16,15], index: 0, kind: input, shape index: {}]   ;;  %s464_s1 = inlined_call_operand.hbm [shape: bf16[15,64], index: 1, kind: input, shape index: {}]   ;;  %s465_s2 = inlined_call_operand.vmem [shape: f32[1,64], index: 2, kind: input, shape index: {}]   ;;  %s466_s3 = inlined_call_operand.hbm [shape: bf16[64,64], index: 3, kind: input, shape index: {}]   ;;  %s467_s4 = inlined_call_operand.hbm [shape: f32[1,64], index: 4, kind: input, shape index: {}]   ;;  %s468_s5 = inlined_call_operand.vmem [shape: f32[2,64], index: 5, kind: input, shape index: {}]   ;;  %s469_s6 = inlined_call_operand.vmem [shape: f32[1,2], index: 6, kind: input, shape index: {}]   ;;  %s470_s7 = inlined_call_operand.vmem [shape: f32[16,2], index: 7, kind: output, shape index: {}]  }
   0x1   :  { %13 = vsyncpa [#allocation5], 0 }
   0x2   :  { %14 = vsyncpa [#allocation8], 0  ;;  %s32_s26 = sshll.u32 %s464_s1, 4  ;;  %s381_s27 = smov [#allocation4]   ;;  %s33_s26 = int_to_ptr.hbm [resolvable:$true] %s32_s26 }
   0x3   :  { %s34_s28 = sshll.u32 %s381_s27, 4  ;;  %s19_s8 = sshll.u32 %s463_s0, 4  ;;  %s35_s28 = int_to_ptr.vmem [resolvable:$true] %s34_s28  ;;  %s20_s8 = int_to_ptr.hbm [resolvable:$true] %s19_s8 }
   0x4   :  { %s382_s9 = smov 64   ;;  %s383_s10 = smov 4  }
   0x5   :  { %40 = dma.hbm_to_vmem [thread:$0]  %s33_s26, 128, %s35_s28, [#allocation5], %s382_s9, %s382_s9, %s383_s10  }
   0x6   :  { %s384_s11 = smov [#allocation2]   ;;  %s47_s15 = sshll.u32 %s466_s3, 4  ;;  %s48_s15 = int_to_ptr.hbm [resolvable:$true] %s47_s15 }
   0x7   :  { %s21_s12 = sshll.u32 %s384_s11, 4  ;;  %s61_s17 = sshll.u32 %s467_s4, 4  ;;  %s22_s12 = int_to_ptr.vmem [resolvable:$true] %s21_s12  ;;  %s62_s17 = int_to_ptr.hbm [resolvable:$true] %s61_s17 }
   0x8   :  { %27 = dma.hbm_to_vmem [thread:$0]  %s20_s8, 128, %s22_s12, [#allocation3], %s382_s9, %s382_s9, %s383_s10  }
   0x9   :  { %s385_s18 = smov [#allocation6]   ;;  %s386_s0 = smov [#allocation7]  }
   0xa   :  { %s49_s19 = sshll.u32 %s385_s18, 4  ;;  %s63_s20 = sshll.u32 %s386_s0, 4  ;;  %s50_s19 = int_to_ptr.vmem [resolvable:$true] %s49_s19  ;;  %s64_s20 = int_to_ptr.vmem [resolvable:$true] %s63_s20 }
   0xb   :  { %55 = dma.hbm_to_vmem [thread:$0]  %s48_s15, 512, %s50_s19, [#allocation5], %s382_s9, %s382_s9, %s383_s10  }
   0xc   :  { %66 = dma.hbm_to_vmem [thread:$0]  %s62_s17, 16, %s64_s20, [#allocation8]  }
   0xd   :  { %375 = dma.done.wait [#allocation3], 128  }
   0xe   :  { %376 = vsyncadd [#allocation3], 4294967168 }
   0xf   :  { %377 = dma.done.wait [#allocation5], 640  }
  0x10   :  { %378 = vsyncadd [#allocation5], 4294966656 }
  0x11   :  { %379 = dma.done.wait [#allocation8], 16  }
  0x12   :  { %380 = vsyncadd [#allocation8], 4294967280  ;;  %vm110_vm0 = vcmask 1046528   ;;  %vm111_vm1 = vcmask 1047552   ;;  %v387_v0 = vmov 65535   ;;  %v262_v3 = vld [vmem:[#allocation4] sm:$0xff] }
  0x13   :  { %v112_v1 = vsel %vm110_vm0, 4294967295, %v387_v0  ;;  %v261_v5 = vld [vmem:[#allocation2] sm:$0xff]  ;;  %vm106_vm2 = vcmask 121856   ;;  %v266_v6 = vld [vmem:[#allocation6 + $0x18] sm:$0xff]  ;;  %v264_v8 = vld [vmem:[#allocation6 + $0x8] sm:$0xff]  ;;  %vm170_vm3 = vcmask 523264  }
  0x14   :  { %v113_v2 = vsel %vm111_vm1, %v112_v1, 0  ;;  %178 = vmatpush.bf16.msra.mxu1 %v266_v6  ;;  %v265_v7 = vld [vmem:[#allocation6 + $0x10] sm:$0xff]  ;;  %v263_v9 = vld [vmem:[#allocation6] sm:$0xff]  ;;  %vm210_vm4 = vcmask 7168   ;;  %vm223_vm5 = vcmask 15360  }
  0x15   :  { %v115_v4 = vand.u32 %v262_v3, %v113_v2  ;;  %v274_v11 = vld [vmem:[%s465_s2] ss:$0 sm:$0xff]  ;;  %v275_v18 = vld [vmem:[#allocation7] ss:$0 sm:$0xff]  ;;  %v276_v21 = vld [vmem:[%s468_s5 + $0x1] ss:$0 sm:$0xff] }
  0x16   :  { %v277_v22 = vld [vmem:[%s468_s5] ss:$0 sm:$0xff] }
  0x17   :  { %124 = vmatpush.bf16.msra.mxu0 %v115_v4  ;;  %v278_v35 = vld [vmem:[%s469_s6] ss:$0 sm:$0xff] }
  0x18   :  { %179 = vmatpush.bf16.msra.mxu1 %v265_v7 }
  0x1a   :  { %241 = vmatmul.msk.bf16.vlgmr.msra.gmra.mxu0 %vm106_vm2, %v261_v5 }
  0x1c   :  { %180 = vmatpush.bf16.msra.mxu1 %v264_v8 }
  0x20   :  { %181 = vmatpush.bf16.msra.mxu1 %v263_v9 }
  0x97   :  { %v126_v10 = vpop.f32.mrf.mxu0 }
  0x98   :  { %v127_v12 = vadd.f32 %v274_v11, %v126_v10 }
  0x9a   :  { %v131_v15 = vmax.f32 %v127_v12, 0.0 }
  0x9f   :  { %v128_v13 = vpop.f32.mrf.mxu0 }
  0xa0   :  { %v129_v14 = vadd.f32 %v274_v11, %v128_v13 }
  0xa2   :  { %v132_v16 = vmax.f32 %v129_v14, 0.0 }
  0xa4   :  { %v133_v17 = vpack.c.bf16 %v132_v16, %v131_v15 }
  0xa6   :  { %258 = vmatmul.msk.bf16.vlgmr.msra.gmra.mxu1 %vm170_vm3, %v133_v17 }
 0x123   :  { %v183_v19 = vpop.f32.mrf.mxu1 }
 0x124   :  { %v184_v20 = vadd.f32 %v275_v18, %v183_v19 }
 0x126   :  { %v188_v23 = vmax.f32 %v184_v20, 0.0 }
 0x128   :  { %v202_v24 = vmul.f32 %v276_v21, %v188_v23  ;;  %v192_v25 = vmul.f32 %v277_v22, %v188_v23 }
 0x12a   :  { %v204_v26 = vsel %vm170_vm3, %v202_v24, 0.0  ;;  %v194_v27 = vsel %vm170_vm3, %v192_v25, 0.0 }
 0x12b   :  { %v185_v28 = vpop.f32.mrf.mxu1  ;;  %205 = vadd.xlane.f32.xlu1 %v204_v26  ;;  %195 = vadd.xlane.f32.xlu0 %v194_v27 }
 0x12c   :  { %v186_v29 = vadd.f32 %v275_v18, %v185_v28 }
 0x12e   :  { %v189_v30 = vmax.f32 %v186_v29, 0.0 }
 0x130   :  { %v203_v31 = vmul.f32 %v276_v21, %v189_v30  ;;  %v193_v32 = vmul.f32 %v277_v22, %v189_v30 }
 0x132   :  { %v207_v33 = vsel %vm170_vm3, %v203_v31, 0.0  ;;  %v197_v34 = vsel %vm170_vm3, %v193_v32, 0.0 }
 0x133   :  { %208 = vadd.xlane.f32.xlu1 %v207_v33  ;;  %198 = vadd.xlane.f32.xlu0 %v197_v34 }
 0x19e   :  { %v206_v36 = vpop.xlane.xlu1 %205  ;;  %v196_v37 = vpop.xlane.xlu0 %195 }
 0x19f   :  { %v211_v38 = vsel %vm210_vm4, %v196_v37, %v206_v36 }
 0x1a0   :  { %v217_v39 = vadd.f32 %v278_v35, %v211_v38 }
 0x1a2   :  { %v259_v40 = vclamps-f32 %v217_v39, 100.0 }
 0x1a4   :  { %224 = vst.msk [vmem:[%s470_s7] sm:$0xff] %vm223_vm5, %v259_v40 }
 0x1a6   :  { %v209_v41 = vpop.xlane.xlu1 %208  ;;  %v199_v42 = vpop.xlane.xlu0 %198 }
 0x1a7   :  { %v212_v43 = vsel %vm210_vm4, %v199_v42, %v209_v41 }
 0x1a8   :  { %v218_v44 = vadd.f32 %v278_v35, %v212_v43 }
 0x1aa   :  { %v260_v45 = vclamps-f32 %v218_v44, 100.0 }
 0x1ac   :  { %225 = vst.msk [vmem:[%s470_s7 + $0x8] sm:$0xff] %vm223_vm5, %v260_v45 }
 0x1ad   :  { %230 = vsyncpa [#allocation3], 1 }
 0x1ae   :  { %231 = vsyncpa [#allocation5], 1 }
 0x1af   :  { %232 = vsyncpa [#allocation8], 1 }

// kernel: tpu_custom_call.1
= control target key start
LH: loop header
LB: loop body
LE: loop exit
PB: predicated region body
PF: predicated region fallthrough
CT: control target
= control target key end

     0   :  { %12 = vsyncpa [#allocation3], 0  ;;  %s463_s0 = inlined_call_operand.hbm [shape: bf16[16,15], index: 0, kind: input, shape index: {}]   ;;  %s464_s1 = inlined_call_operand.hbm [shape: bf16[15,64], index: 1, kind: input, shape index: {}]   ;;  %s465_s2 = inlined_call_operand.vmem [shape: f32[1,64], index: 2, kind: input, shape index: {}]   ;;  %s466_s3 = inlined_call_operand.hbm [shape: bf16[64,64], index: 3, kind: input, shape index: {}]   ;;  %s467_s4 = inlined_call_operand.hbm [shape: f32[1,64], index: 4, kind: input, shape index: {}]   ;;  %s468_s5 = inlined_call_operand.vmem [shape: f32[2,64], index: 5, kind: input, shape index: {}]   ;;  %s469_s6 = inlined_call_operand.vmem [shape: f32[1,2], index: 6, kind: input, shape index: {}]   ;;  %s470_s7 = inlined_call_operand.vmem [shape: f32[16,2], index: 7, kind: output, shape index: {}]  }
   0x1   :  { %13 = vsyncpa [#allocation5], 0 }
   0x2   :  { %14 = vsyncpa [#allocation8], 0  ;;  %s32_s26 = sshll.u32 %s464_s1, 4  ;;  %s381_s27 = smov [#allocation4]   ;;  %s33_s26 = int_to_ptr.hbm [resolvable:$true] %s32_s26 }
   0x3   :  { %s34_s28 = sshll.u32 %s381_s27, 4  ;;  %s19_s8 = sshll.u32 %s463_s0, 4  ;;  %s35_s28 = int_to_ptr.vmem [resolvable:$true] %s34_s28  ;;  %s20_s8 = int_to_ptr.hbm [resolvable:$true] %s19_s8 }
   0x4   :  { %s382_s9 = smov 64   ;;  %s383_s10 = smov 4  }
   0x5   :  { %40 = dma.hbm_to_vmem [thread:$0]  %s33_s26, 128, %s35_s28, [#allocation5], %s382_s9, %s382_s9, %s383_s10  }
   0x6   :  { %s384_s11 = smov [#allocation2]   ;;  %s47_s15 = sshll.u32 %s466_s3, 4  ;;  %s48_s15 = int_to_ptr.hbm [resolvable:$true] %s47_s15 }
   0x7   :  { %s21_s12 = sshll.u32 %s384_s11, 4  ;;  %s61_s17 = sshll.u32 %s467_s4, 4  ;;  %s22_s12 = int_to_ptr.vmem [resolvable:$true] %s21_s12  ;;  %s62_s17 = int_to_ptr.hbm [resolvable:$true] %s61_s17 }
   0x8   :  { %27 = dma.hbm_to_vmem [thread:$0]  %s20_s8, 128, %s22_s12, [#allocation3], %s382_s9, %s382_s9, %s383_s10  }
   0x9   :  { %s385_s18 = smov [#allocation6]   ;;  %s386_s0 = smov [#allocation7]  }
   0xa   :  { %s49_s19 = sshll.u32 %s385_s18, 4  ;;  %s63_s20 = sshll.u32 %s386_s0, 4  ;;  %s50_s19 = int_to_ptr.vmem [resolvable:$true] %s49_s19  ;;  %s64_s20 = int_to_ptr.vmem [resolvable:$true] %s63_s20 }
   0xb   :  { %55 = dma.hbm_to_vmem [thread:$0]  %s48_s15, 512, %s50_s19, [#allocation5], %s382_s9, %s382_s9, %s383_s10  }
   0xc   :  { %66 = dma.hbm_to_vmem [thread:$0]  %s62_s17, 16, %s64_s20, [#allocation8]  }
   0xd   :  { %375 = dma.done.wait [#allocation3], 128  }
   0xe   :  { %376 = vsyncadd [#allocation3], 4294967168 }
   0xf   :  { %377 = dma.done.wait [#allocation5], 640  }
  0x10   :  { %378 = vsyncadd [#allocation5], 4294966656 }
  0x11   :  { %379 = dma.done.wait [#allocation8], 16  }
  0x12   :  { %380 = vsyncadd [#allocation8], 4294967280  ;;  %vm110_vm0 = vcmask 1046528   ;;  %vm111_vm1 = vcmask 1047552   ;;  %v387_v0 = vmov 65535   ;;  %v262_v3 = vld [vmem:[#allocation4] sm:$0xff] }
  0x13   :  { %v112_v1 = vsel %vm110_vm0, 4294967295, %v387_v0  ;;  %v261_v5 = vld [vmem:[#allocation2] sm:$0xff]  ;;  %vm106_vm2 = vcmask 121856   ;;  %v266_v6 = vld [vmem:[#allocation6 + $0x18] sm:$0xff]  ;;  %v264_v8 = vld [vmem:[#allocation6 + $0x8] sm:$0xff]  ;;  %vm170_vm3 = vcmask 523264  }
  0x14   :  { %v113_v2 = vsel %vm111_vm1, %v112_v1, 0  ;;  %178 = vmatpush.bf16.msra.mxu1 %v266_v6  ;;  %v265_v7 = vld [vmem:[#allocation6 + $0x10] sm:$0xff]  ;;  %v263_v9 = vld [vmem:[#allocation6] sm:$0xff]  ;;  %vm210_vm4 = vcmask 7168   ;;  %vm223_vm5 = vcmask 15360  }
  0x15   :  { %v115_v4 = vand.u32 %v262_v3, %v113_v2  ;;  %v274_v11 = vld [vmem:[%s465_s2] ss:$0 sm:$0xff]  ;;  %v275_v18 = vld [vmem:[#allocation7] ss:$0 sm:$0xff]  ;;  %v276_v21 = vld [vmem:[%s468_s5 + $0x1] ss:$0 sm:$0xff] }
  0x16   :  { %v277_v22 = vld [vmem:[%s468_s5] ss:$0 sm:$0xff] }
  0x17   :  { %124 = vmatpush.bf16.msra.mxu0 %v115_v4  ;;  %v278_v35 = vld [vmem:[%s469_s6] ss:$0 sm:$0xff] }
  0x18   :  { %179 = vmatpush.bf16.msra.mxu1 %v265_v7 }
  0x1a   :  { %241 = vmatmul.msk.bf16.vlgmr.msra.gmra.mxu0 %vm106_vm2, %v261_v5 }
  0x1c   :  { %180 = vmatpush.bf16.msra.mxu1 %v264_v8 }
  0x20   :  { %181 = vmatpush.bf16.msra.mxu1 %v263_v9 }
  0x97   :  { %v126_v10 = vpop.f32.mrf.mxu0 }
  0x98   :  { %v127_v12 = vadd.f32 %v274_v11, %v126_v10 }
  0x9a   :  { %v131_v15 = vmax.f32 %v127_v12, 0.0 }
  0x9f   :  { %v128_v13 = vpop.f32.mrf.mxu0 }
  0xa0   :  { %v129_v14 = vadd.f32 %v274_v11, %v128_v13 }
  0xa2   :  { %v132_v16 = vmax.f32 %v129_v14, 0.0 }
  0xa4   :  { %v133_v17 = vpack.c.bf16 %v132_v16, %v131_v15 }
  0xa6   :  { %258 = vmatmul.msk.bf16.vlgmr.msra.gmra.mxu1 %vm170_vm3, %v133_v17 }
 0x123   :  { %v183_v19 = vpop.f32.mrf.mxu1 }
 0x124   :  { %v184_v20 = vadd.f32 %v275_v18, %v183_v19 }
 0x126   :  { %v188_v23 = vmax.f32 %v184_v20, 0.0 }
 0x128   :  { %v202_v24 = vmul.f32 %v276_v21, %v188_v23  ;;  %v192_v25 = vmul.f32 %v277_v22, %v188_v23 }
 0x12a   :  { %v204_v26 = vsel %vm170_vm3, %v202_v24, 0.0  ;;  %v194_v27 = vsel %vm170_vm3, %v192_v25, 0.0 }
 0x12b   :  { %v185_v28 = vpop.f32.mrf.mxu1  ;;  %205 = vadd.xlane.f32.xlu1 %v204_v26  ;;  %195 = vadd.xlane.f32.xlu0 %v194_v27 }
 0x12c   :  { %v186_v29 = vadd.f32 %v275_v18, %v185_v28 }
 0x12e   :  { %v189_v30 = vmax.f32 %v186_v29, 0.0 }
 0x130   :  { %v203_v31 = vmul.f32 %v276_v21, %v189_v30  ;;  %v193_v32 = vmul.f32 %v277_v22, %v189_v30 }
 0x132   :  { %v207_v33 = vsel %vm170_vm3, %v203_v31, 0.0  ;;  %v197_v34 = vsel %vm170_vm3, %v193_v32, 0.0 }
 0x133   :  { %208 = vadd.xlane.f32.xlu1 %v207_v33  ;;  %198 = vadd.xlane.f32.xlu0 %v197_v34 }
 0x19e   :  { %v206_v36 = vpop.xlane.xlu1 %205  ;;  %v196_v37 = vpop.xlane.xlu0 %195 }
 0x19f   :  { %v211_v38 = vsel %vm210_vm4, %v196_v37, %v206_v36 }
 0x1a0   :  { %v217_v39 = vadd.f32 %v278_v35, %v211_v38 }
 0x1a2   :  { %v259_v40 = vclamps-f32 %v217_v39, 100.0 }
 0x1a4   :  { %224 = vst.msk [vmem:[%s470_s7] sm:$0xff] %vm223_vm5, %v259_v40 }
 0x1a6   :  { %v209_v41 = vpop.xlane.xlu1 %208  ;;  %v199_v42 = vpop.xlane.xlu0 %198 }
 0x1a7   :  { %v212_v43 = vsel %vm210_vm4, %v199_v42, %v209_v41 }
 0x1a8   :  { %v218_v44 = vadd.f32 %v278_v35, %v212_v43 }
 0x1aa   :  { %v260_v45 = vclamps-f32 %v218_v44, 100.0 }
 0x1ac   :  { %225 = vst.msk [vmem:[%s470_s7 + $0x8] sm:$0xff] %vm223_vm5, %v260_v45 }
 0x1ad   :  { %230 = vsyncpa [#allocation3], 1 }
 0x1ae   :  { %231 = vsyncpa [#allocation5], 1 }
 0x1af   :  { %232 = vsyncpa [#allocation8], 1 }

</bundles_post_ra>
